<compile_context>
chip_gen: v7x
topology: tpu7x:2x2x1
jax: 0.10.0
libtpu: 0.0.40
codegen_flags: <defaults>
</compile_context>

<pallas_src>
import functools

import jax
import jax.numpy as jnp
import numpy as np
from jax import lax
from jax.experimental import pallas as pl
from jax.experimental.pallas import tpu as pltpu


# "A @ B.T": contract the last dim of both operands (QK^T — both are activations,
# so the NT form is inherent; it feeds the MXU without an explicit transpose).
_NT_DIMS = (((1,), (1,)), ((), ()))


def _pick_tile(dim, max_tile, align):
    """Largest tile <= max_tile that is `align`-granular and divides `dim`
    (or the full dim when it already fits / no aligned divisor exists)."""
    if dim <= max_tile:
        return dim
    t = (max_tile // align) * align
    while t >= align:
        if dim % t == 0:
            return t
        t -= align
    return dim


def _vmem_limit(nbytes):
    """Clamp an explicit VMEM request to [32 MiB default, 64 MiB v7x-safe]."""
    return int(min(64 * 2**20, max(32 * 2**20, nbytes)))


# ---------------------------------------------------------------------------
# Kernel 1: fused Q/K/V projection (no bias):  [q | k | v] = x @ W_qkv
#   W_qkv = [Wq.T | Wk.T | Wv.T]  (in, out) layout, shape (E, 3E), bf16.
# ---------------------------------------------------------------------------
def _qkv_proj_kernel_resident(x_ref, w_ref, q_ref, k_ref, v_ref, *, embed_dim):
    """Weights fully VMEM-resident (constant index_map); single matmul per row tile."""
    E = embed_dim
    x = x_ref[...].astype(jnp.bfloat16)                               # bf16 MXU inputs
    y = jnp.dot(x, w_ref[...], preferred_element_type=jnp.float32)    # (tm, 3E) f32
    q_ref[...] = y[:, :E].astype(q_ref.dtype)
    k_ref[...] = y[:, E:2 * E].astype(k_ref.dtype)
    v_ref[...] = y[:, 2 * E:].astype(v_ref.dtype)


def _qkv_proj_kernel_ktiled(x_ref, w_ref, q_ref, k_ref, v_ref, acc_ref, *, embed_dim):
    """Contraction-tiled fallback (weights streamed by k tiles, f32 accumulator)."""
    E = embed_dim

    @pl.when(pl.program_id(1) == 0)
    def _init():
        acc_ref[...] = jnp.zeros_like(acc_ref)

    x = x_ref[...].astype(jnp.bfloat16)
    acc_ref[...] += jnp.dot(x, w_ref[...], preferred_element_type=jnp.float32)

    @pl.when(pl.program_id(1) == pl.num_programs(1) - 1)
    def _finalize():
        y = acc_ref[...]
        q_ref[...] = y[:, :E].astype(q_ref.dtype)
        k_ref[...] = y[:, E:2 * E].astype(k_ref.dtype)
        v_ref[...] = y[:, 2 * E:].astype(v_ref.dtype)


def qkv_proj(x, w_qkv, *, tm_max=256, tk_max=256,
             resident_weight_budget=16 * 2**20):
    # x: (N, E) f32; w_qkv: (E, 3E) bf16 in (in, out) layout.
    N, E = x.shape
    three_e = w_qkv.shape[1]
    tm = _pick_tile(N, tm_max, 8)
    out_shape = (jax.ShapeDtypeStruct((N, E), jnp.bfloat16),) * 3

    w_bytes = E * three_e * 2  # bf16
    if w_bytes <= resident_weight_budget:
        # Resident weight: fetched once for the whole grid (constant block index).
        grid = (N // tm,)
        kernel = functools.partial(_qkv_proj_kernel_resident, embed_dim=E)
        in_specs = [pl.BlockSpec((tm, E), lambda m: (m, 0)),
                    pl.BlockSpec((E, three_e), lambda m: (0, 0))]
        out_spec = pl.BlockSpec((tm, E), lambda m: (m, 0))
        scratch = []
        dims = ("parallel",)
        footprint = 2 * tm * E * 4 + 2 * E * three_e * 2 + 3 * 2 * tm * E * 2
    else:
        # Streamed weight (large E): tile the contraction, keep an f32 accumulator.
        tk = _pick_tile(E, tk_max, 128)
        grid = (N // tm, E // tk)
        kernel = functools.partial(_qkv_proj_kernel_ktiled, embed_dim=E)
        in_specs = [pl.BlockSpec((tm, tk), lambda m, kk: (m, kk)),
                    pl.BlockSpec((tk, three_e), lambda m, kk: (kk, 0))]
        out_spec = pl.BlockSpec((tm, E), lambda m, kk: (m, 0))
        scratch = [pltpu.VMEM((tm, three_e), jnp.float32)]
        dims = ("parallel", "arbitrary")
        footprint = (2 * tm * tk * 4 + 2 * tk * three_e * 2
                     + tm * three_e * 4 + 3 * 2 * tm * E * 2)

    return pl.pallas_call(
        kernel,
        out_shape=out_shape,
        grid=grid,
        in_specs=in_specs,
        out_specs=(out_spec,) * 3,
        scratch_shapes=scratch,
        compiler_params=pltpu.CompilerParams(
            dimension_semantics=dims,
            vmem_limit_bytes=_vmem_limit(int(footprint * 1.25))),
    )(x, w_qkv)


# ---------------------------------------------------------------------------
# Kernel 2: multi-head attention + fused output Linear, directly in (L, B, E) layout.
#   Per (batch, q-tile) grid step:
#     for each head h (statically unrolled):
#       energy = q_h @ k_h.T ; p = softmax(energy/sqrt(E) + add_mask) ; o_h = p @ v_h
#       y += o_h @ Wo_h                # per-head Wo accumulation (no concat / epilogue)
#     out = y + bo                     # stored straight into the (L, B, E) output
# ---------------------------------------------------------------------------
def _attn_outproj_kernel(q_ref, k_ref, v_ref, mask_ref, wo_ref, bo_ref, o_ref,
                         *, heads, head_dim, inv_scale):
    H, D = heads, head_dim
    # Compact int8 (0/1) mask -> additive f32 mask (0 / -1e30) in-kernel (cheap VPU
    # filler; avoids DMA-ing and keeping an (L, L) f32 buffer resident).
    add_mask = mask_ref[...].astype(jnp.float32) * jnp.float32(-1e30)   # (tq, L)

    y = jnp.zeros(o_ref.shape, jnp.float32)                             # (tq, E) f32
    for h in range(H):                                                   # static unroll
        qh = q_ref[:, h * D:(h + 1) * D]                                 # (tq, D) bf16
        kh = k_ref[:, h * D:(h + 1) * D]                                 # (L, D) bf16
        vh = v_ref[:, h * D:(h + 1) * D]                                 # (L, D) bf16
        energy = lax.dot_general(qh, kh, _NT_DIMS,
                                 preferred_element_type=jnp.float32)    # (tq, L) f32
        s = energy * inv_scale + add_mask
        s = s - jnp.max(s, axis=-1, keepdims=True)
        p = jnp.exp(s)
        p = p * pl.reciprocal(jnp.sum(p, axis=-1, keepdims=True), approx=True)
        head_out = jnp.dot(p.astype(vh.dtype), vh,
                           preferred_element_type=jnp.float32)           # (tq, D) f32
        # Fused output projection: accumulate this head's contribution through Wo_h.
        y = y + jnp.dot(head_out.astype(wo_ref.dtype), wo_ref[h],
                        preferred_element_type=jnp.float32)              # (tq, E) f32

    o_ref[...] = (y + bo_ref[...]).astype(o_ref.dtype)                   # (tq, E) store


def attention_out_proj(q, k, v, mask_i8, wo_heads, bo, heads, embed_dim, *, tq_max=256):
    # q, k, v: (L, B, E) bf16; mask_i8: (L, L) int8 (1 = masked);
    # wo_heads: (H, D, E) bf16 (per-head slices of Wo^T); bo: (1, E) f32.
    L, B, E = q.shape
    H = heads
    D = E // H
    inv_scale = 1.0 / float(np.sqrt(embed_dim))

    tq = _pick_tile(L, tq_max, 8)
    nq = L // tq

    # Squeezed-batch blocks: read/write per-batch (tq/L, E) slabs straight from the
    # (L, B, E) layout -- no wrapper transposes before or after the kernel.
    qo_spec = pl.BlockSpec((tq, None, E), lambda b, qi: (qi, b, 0))
    kv_spec = pl.BlockSpec((L, None, E), lambda b, qi: (0, b, 0))   # fetched once per b

    footprint = (2 * tq * E * 2 + 2 * 2 * L * E * 2 + 2 * tq * L
                 + 2 * H * D * E * 2 + 2 * tq * E * 4 + tq * L * 4)

    return pl.pallas_call(
        functools.partial(_attn_outproj_kernel,
                          heads=H, head_dim=D, inv_scale=inv_scale),
        out_shape=jax.ShapeDtypeStruct((L, B, E), jnp.float32),
        grid=(B, nq),
        in_specs=[qo_spec, kv_spec, kv_spec,
                  pl.BlockSpec((tq, L), lambda b, qi: (qi, 0)),
                  pl.BlockSpec((H, D, E), lambda b, qi: (0, 0, 0)),
                  pl.BlockSpec((1, E), lambda b, qi: (0, 0))],
        out_specs=qo_spec,
        compiler_params=pltpu.CompilerParams(
            dimension_semantics=("parallel", "parallel"),
            vmem_limit_bytes=_vmem_limit(int(footprint * 1.25))),
    )(q, k, v, mask_i8, wo_heads, bo)


# ---------------------------------------------------------------------------
# Parameter prep (one-time, not per forward):
#   * Wq/Wk/Wv fused and pre-transposed to (in, out) layout -> single (E, 3E) bf16.
#   * Wo pre-transposed and pre-split per head -> (H, D, E) bf16.
# ---------------------------------------------------------------------------
def prepare_params(params, heads):
    E = params["wq"].shape[0]
    H = heads
    D = E // H
    w_qkv = jnp.concatenate(
        [params["wq"].T, params["wk"].T, params["wv"].T], axis=1
    ).astype(jnp.bfloat16)                                   # (E, 3E), (in, out) layout
    wo_heads = params["wo"].T.reshape(H, D, E).astype(jnp.bfloat16)   # Wo^T head slices
    bo = params["bo"].astype(jnp.float32).reshape(1, E)
    return {"w_qkv": w_qkv, "wo_heads": wo_heads, "bo": bo}


# ---------------------------------------------------------------------------
# Full SelfAttention forward (no HBM transposes; layout stays (L, B, E) throughout).
# ---------------------------------------------------------------------------
def self_attention_forward(src, mask_bool, prepared, heads):
    # src: (L, B, E) f32; mask_bool: (L, L) with True = masked.
    L, B, E = src.shape

    x = src.reshape(L * B, E)                          # free row-major reshape
    q, k, v = qkv_proj(x, prepared["w_qkv"])           # each (L*B, E) bf16

    qb = q.reshape(L, B, E)                            # free metadata reshapes
    kb = k.reshape(L, B, E)
    vb = v.reshape(L, B, E)

    mask_i8 = mask_bool.astype(jnp.int8)               # compact 0/1 mask (4x fewer bytes)

    return attention_out_proj(qb, kb, vb, mask_i8, prepared["wo_heads"],
                              prepared["bo"], heads, E)   # (L, B, E) f32


# ---------------------------------------------------------------------------
# Pure-JAX f32 reference (mirrors the PyTorch forward exactly)
# ---------------------------------------------------------------------------
def self_attention_reference(src, mask_bool, params, heads):
    L, B, E = src.shape
    H = heads
    D = E // H
    wq, wk, wv, wo, bo = (params["wq"], params["wk"], params["wv"],
                          params["wo"], params["bo"])

    x = jnp.swapaxes(src, 0, 1)                     # (B, L, E)
    Q = x @ wq.T
    K = x @ wk.T
    V = x @ wv.T
    Qh = Q.reshape(B, L, H, D)
    Kh = K.reshape(B, L, H, D)
    Vh = V.reshape(B, L, H, D)
    energy = jnp.einsum("nqhd,nkhd->nhqk", Qh, Kh)
    energy = jnp.where(mask_bool, -jnp.inf, energy)
    attn = jax.nn.softmax(energy / jnp.sqrt(jnp.float32(E)), axis=-1)
    out = jnp.einsum("nhql,nlhd->nqhd", attn, Vh).reshape(B, L, E)
    out = out @ wo.T + bo
    return jnp.swapaxes(out, 0, 1)                  # (L, B, E)


if __name__ == "__main__":
    # Small shapes consistent with the module: seq L=8, batch B=2, embed E=32, heads H=4.
    L, B, E, H = 8, 2, 32, 4

    key = jax.random.PRNGKey(0)
    k_src, k_wq, k_wk, k_wv, k_wo, k_bo = jax.random.split(key, 6)

    src = jax.random.normal(k_src, (L, B, E), dtype=jnp.float32)

    # Deterministic parameter init (synthetic; shapes match nn.Linear(E, E)).
    params = {
        "wq": 0.1 * jax.random.normal(k_wq, (E, E), dtype=jnp.float32),
        "wk": 0.1 * jax.random.normal(k_wk, (E, E), dtype=jnp.float32),
        "wv": 0.1 * jax.random.normal(k_wv, (E, E), dtype=jnp.float32),
        "wo": 0.1 * jax.random.normal(k_wo, (E, E), dtype=jnp.float32),
        "bo": 0.1 * jax.random.normal(k_bo, (E,), dtype=jnp.float32),
    }

    # Causal mask: True (masked) for key positions after the query position.
    mask_bool = jnp.triu(jnp.ones((L, L), dtype=bool), k=1)

    prepared = prepare_params(params, H)
    out = self_attention_forward(src, mask_bool, prepared, H)
    out = jax.block_until_ready(out)

    ref = self_attention_reference(src, mask_bool, params, H)
    # bf16 MXU inputs + approx reciprocal => relaxed (but still tight) tolerance.
    np.testing.assert_allclose(np.asarray(out), np.asarray(ref), atol=3e-2, rtol=3e-2)

    print("KERNEL_OK")
</pallas_src>

<mosaic_0001>
module attributes {stable_mosaic.version = 11 : i64} {
  func.func @_qkv_proj_kernel_resident(%arg0: i32, %arg1: memref<16x32xf32, #tpu.memory_space<vmem>>, %arg2: memref<32x96xbf16, #tpu.memory_space<vmem>>, %arg3: memref<16x32xbf16, #tpu.memory_space<vmem>>, %arg4: memref<16x32xbf16, #tpu.memory_space<vmem>>, %arg5: memref<16x32xbf16, #tpu.memory_space<vmem>>) attributes {dimension_semantics = [#tpu.dimension_semantics<parallel>], iteration_bounds = array<i64: 1>, scalar_prefetch = 0 : i64, scratch_operands = 0 : i64, tpu.core_type = #tpu.core_type<tc>, window_params = [{transform_indices = @transform_0, window_bounds = array<i64: 16, 32>}, {pipeline_mode = #tpu.pipeline_mode<synchronous>, transform_indices = @transform_1, window_bounds = array<i64: 32, 96>}, {transform_indices = @transform_2, window_bounds = array<i64: 16, 32>}, {transform_indices = @transform_3, window_bounds = array<i64: 16, 32>}, {transform_indices = @transform_4, window_bounds = array<i64: 16, 32>}]} {
    %c0 = arith.constant 0 : index
    %c0_0 = arith.constant 0 : index
    %0 = vector.load %arg1[%c0, %c0_0] : memref<16x32xf32, #tpu.memory_space<vmem>>, vector<16x32xf32>
    %1 = arith.truncf %0 : vector<16x32xf32> to vector<16x32xbf16>
    %c0_1 = arith.constant 0 : index
    %c0_2 = arith.constant 0 : index
    %2 = vector.load %arg2[%c0_1, %c0_2] : memref<32x96xbf16, #tpu.memory_space<vmem>>, vector<32x96xbf16>
    %cst = arith.constant dense<0.000000e+00> : vector<16x96xf32>
    %3 = tpu.matmul %1, %2, %cst {dimension_numbers = #tpu.dot_dimension_numbers<[1], [0], [0], [1], [0, 0, 1, 1], [], []>} : vector<16x32xbf16>, vector<32x96xbf16>, vector<16x96xf32> -> vector<16x96xf32>
    %4 = vector.extract_strided_slice %3 {offsets = [0, 0], sizes = [16, 32], strides = [1, 1]} : vector<16x96xf32> to vector<16x32xf32>
    %5 = arith.truncf %4 : vector<16x32xf32> to vector<16x32xbf16>
    %c0_3 = arith.constant 0 : index
    %c0_4 = arith.constant 0 : index
    %6 = vector.load %arg3[%c0_3, %c0_4] : memref<16x32xbf16, #tpu.memory_space<vmem>>, vector<16x32xbf16>
    tpu.vector_store %arg3[%c0_3, %c0_4], %5 {strides = array<i32>} : memref<16x32xbf16, #tpu.memory_space<vmem>>, vector<16x32xbf16>,
    %7 = vector.extract_strided_slice %3 {offsets = [0, 32], sizes = [16, 32], strides = [1, 1]} : vector<16x96xf32> to vector<16x32xf32>
    %8 = arith.truncf %7 : vector<16x32xf32> to vector<16x32xbf16>
    %c0_5 = arith.constant 0 : index
    %c0_6 = arith.constant 0 : index
    %9 = vector.load %arg4[%c0_5, %c0_6] : memref<16x32xbf16, #tpu.memory_space<vmem>>, vector<16x32xbf16>
    tpu.vector_store %arg4[%c0_5, %c0_6], %8 {strides = array<i32>} : memref<16x32xbf16, #tpu.memory_space<vmem>>, vector<16x32xbf16>,
    %10 = vector.extract_strided_slice %3 {offsets = [0, 64], sizes = [16, 32], strides = [1, 1]} : vector<16x96xf32> to vector<16x32xf32>
    %11 = arith.truncf %10 : vector<16x32xf32> to vector<16x32xbf16>
    %c0_7 = arith.constant 0 : index
    %c0_8 = arith.constant 0 : index
    %12 = vector.load %arg5[%c0_7, %c0_8] : memref<16x32xbf16, #tpu.memory_space<vmem>>, vector<16x32xbf16>
    tpu.vector_store %arg5[%c0_7, %c0_8], %11 {strides = array<i32>} : memref<16x32xbf16, #tpu.memory_space<vmem>>, vector<16x32xbf16>,
    return
  }
  func.func @transform_0(%arg0: i32) -> (i32, i32) {
    %c0_i32 = arith.constant 0 : i32
    %c0_i32_0 = arith.constant 0 : i32
    return %arg0, %c0_i32 : i32, i32
  }
  func.func @transform_1(%arg0: i32) -> (i32, i32) {
    %c0_i32 = arith.constant 0 : i32
    %c0_i32_0 = arith.constant 0 : i32
    %c0_i32_1 = arith.constant 0 : i32
    return %c0_i32, %c0_i32_0 : i32, i32
  }
  func.func @transform_2(%arg0: i32) -> (i32, i32) {
    %c0_i32 = arith.constant 0 : i32
    %c0_i32_0 = arith.constant 0 : i32
    return %arg0, %c0_i32 : i32, i32
  }
  func.func @transform_3(%arg0: i32) -> (i32, i32) {
    %c0_i32 = arith.constant 0 : i32
    %c0_i32_0 = arith.constant 0 : i32
    return %arg0, %c0_i32 : i32, i32
  }
  func.func @transform_4(%arg0: i32) -> (i32, i32) {
    %c0_i32 = arith.constant 0 : i32
    %c0_i32_0 = arith.constant 0 : i32
    return %arg0, %c0_i32 : i32, i32
  }
}

</mosaic_0001>

<bundles_post_ra>
// kernel: tpu_custom_call.1
= control target key start
LH: loop header
LB: loop body
LE: loop exit
PB: predicated region body
PF: predicated region fallthrough
CT: control target
= control target key end

     0   :  { %10 = vsyncpa [#allocation3], 0  ;;  %s459_s0 = inlined_call_operand.hbm [shape: f32[16,32], index: 0, kind: input, shape index: {}]   ;;  %s460_s1 = inlined_call_operand.hbm [shape: bf16[32,96], index: 1, kind: input, shape index: {}]   ;;  %s461_s2 = inlined_call_operand.hbm [shape: bf16[16,32], index: 2, kind: output, shape index: {0}]   ;;  %s462_s3 = inlined_call_operand.hbm [shape: bf16[16,32], index: 3, kind: output, shape index: {1}]   ;;  %s463_s4 = inlined_call_operand.hbm [shape: bf16[16,32], index: 4, kind: output, shape index: {2}]  }
   0x1   :  { %11 = vsyncpa [#allocation6], 0 }
   0x2   :  { %12 = vsyncpa [#allocation4], 0 }
   0x3   :  { %13 = vsyncpa [#allocation9], 0  ;;  %s335_s15 = smov [#allocation2]   ;;  %s217_s19 = scalar_lea.hbm %s459_s0, 256 }
   0x4   :  { %s19_s16 = sshll.u32 %s335_s15, 4  ;;  %p218_p0 = scmp.ne.s32.totalorder %s459_s0, %s217_s19  ;;  %s20_s16 = int_to_ptr.vmem [resolvable:$true] %s19_s16 }
   0x5   :  { %p221_p1 = scmp.lt.u32.totalorder %s217_s19, %s459_s0 }
   0x7   :  { %p223_p2 = pnand %p221_p1, %p218_p0 }
   0x9   :  { %226 = shalt.err (!%p223_p2)
}
   0xa   :  { %s227_s24 = scalar_lea.vmem %s20_s16, 256  ;;  %p232_p4 = scmp.lt.s32.totalorder %s20_s16, %s20_s16 }
   0xb   :  { %p228_p3 = scmp.ne.s32.totalorder %s20_s16, %s227_s24  ;;  %p233_p5 = scmp.lt.s32.totalorder %s227_s24, %s227_s24 }
   0xd   :  { %p234_p6 = por %p233_p5, %p232_p4 }
   0xf   :  { %p235_p7 = pnand %p234_p6, %p228_p3 }
  0x11   :  { %238 = shalt.err (!%p235_p7)
}
  0x12   :  { %s336_s25 = smov 128   ;;  %s337_s26 = smov 8  }
  0x13   :  { %25 = dma.hbm_to_vmem [thread:$0]  %s459_s0, 256, %s20_s16, [#allocation3], %s336_s25, %s336_s25, %s337_s26  }
  0x14   :  { %s338_s29 = smov [#allocation5]   ;;  %s239_s7 = scalar_lea.hbm %s460_s1, 256 }
  0x15   :  { %s31_s30 = sshll.u32 %s338_s29, 4  ;;  %p240_p8 = scmp.ne.s32.totalorder %s460_s1, %s239_s7  ;;  %s32_s30 = int_to_ptr.vmem [resolvable:$true] %s31_s30 }
  0x16   :  { %p243_p9 = scmp.lt.u32.totalorder %s239_s7, %s460_s1 }
  0x18   :  { %p245_p10 = pnand %p243_p9, %p240_p8 }
  0x1a   :  { %248 = shalt.err (!%p245_p10)
}
  0x1b   :  { %s249_s12 = scalar_lea.vmem %s32_s30, 256  ;;  %p254_p12 = scmp.lt.s32.totalorder %s32_s30, %s32_s30 }
  0x1c   :  { %p250_p11 = scmp.ne.s32.totalorder %s32_s30, %s249_s12  ;;  %p255_p13 = scmp.lt.s32.totalorder %s249_s12, %s249_s12 }
  0x1e   :  { %p256_p0 = por %p255_p13, %p254_p12 }
  0x20   :  { %p257_p1 = pnand %p256_p0, %p250_p11 }
  0x22   :  { %260 = shalt.err (!%p257_p1)
}
  0x23   :  { %s339_s0 = smov 64   ;;  %s340_s13 = smov 4  }
  0x24   :  { %37 = dma.hbm_to_vmem [thread:$0]  %s460_s1, 256, %s32_s30, [#allocation6], %s339_s0, %s339_s0, %s340_s13  }
  0x25   :  { %327 = dma.done.wait [#allocation3], 256  }
  0x26   :  { %328 = vsyncadd [#allocation3], 4294967040 }
  0x27   :  { %329 = dma.done.wait [#allocation6], 256  }
  0x28   :  { %330 = vsyncadd [#allocation6], 4294967040  ;;  %v341_v0 = vmov 0.0   ;;  %vm342_vm0 = vmmov 0   ;;  %v215_v1 = vld [vmem:[#allocation5] sm:$0xff]   ;;  %v216_v2 = vld [vmem:[#allocation5 + $0x8] sm:$0xff]  }
  0x29   :  { %195 = vmatprep.subr.bf16.mxu0 %v341_v0  ;;  %199 = vmatprep.mubr.msk.bf16.mxu0 %vm342_vm0, %v341_v0  ;;  %v45_v3 = vld [vmem:[#allocation2] sm:$0xff]  ;;  %v46_v4 = vld [vmem:[#allocation2 + $0x8] sm:$0xff]  ;;  %vm64_vm1 = vcmask 261120   ;;  %vm117_vm2 = vcmask 257024   ;;  %s343_s1 = smov [#allocation7]   ;;  %s344_s17 = smov 96  }
  0x2a   :  { %196 = vmatpush3.bf16.msra.mxu0 %v215_v1  ;;  %v47_v5 = vpack.c.bf16 %v46_v4, %v45_v3  ;;  %s141_s16 = sshll.u32 %s343_s1, 4  ;;  %s142_s16 = int_to_ptr.vmem [resolvable:$true] %s141_s16 }
  0x2b   :  { %197 = vmatprep.subr.bf16.mxu0 %v341_v0  ;;  %s261_s18 = scalar_lea.vmem %s142_s16, 128  ;;  %p266_p3 = scmp.lt.s32.totalorder %s142_s16, %s142_s16 }
  0x2c   :  { %p262_p2 = scmp.ne.s32.totalorder %s142_s16, %s261_s18  ;;  %p267_p4 = scmp.lt.s32.totalorder %s261_s18, %s261_s18 }
  0x2e   :  { %198 = vmatpush3.bf16.msra.mxu0 %v216_v2  ;;  %p268_p5 = por %p267_p4, %p266_p3 }
  0x30   :  { %p269_p6 = pnand %p268_p5, %p262_p2 }
  0x31   :  { %200 = vmatmul.mubr.msk.bf16.vlgmr.msra.gmra.mrb[0].mxu0 %vm64_vm1, %v47_v5 }
 0x104   :  { %v102_v6 = vpop.f32.mrb[0].mxu0 }
 0x105   :  { %v190_v7 = vpack.c.bf16 %v102_v6, %v102_v6  ;;  %v201_v8 = vpop.f32.mrb[1].mxu0 }
 0x106   :  { %v105_v9 = vpop.f32.mrb[2].mxu0 }
 0x107   :  { %v191_v10 = vpack.c.bf16 %v105_v9, %v105_v9  ;;  %128 = vrot.lane.b32.xlu1 %v190_v7, %s339_s0  ;;  %120 = vrot.lane.b32.xlu0 %v190_v7, %s344_s17  ;;  %v202_v11 = vpop.f32.mrb[3].mxu0  ;;  %118 = vst.msk [vmem:[#allocation7] sm:$0xf] %vm117_vm2, %v190_v7 }
 0x109   :  { %119 = vst.msk [vmem:[#allocation7 + $0x4] sm:$0xf] %vm117_vm2, %v191_v10 }
 0x10a   :  { %272 = shalt.err (!%p269_p6)
}
 0x10b   :  { %s273_s21 = scalar_lea.hbm %s461_s2, 128 }
 0x10c   :  { %p274_p7 = scmp.ne.s32.totalorder %s461_s2, %s273_s21  ;;  %p277_p8 = scmp.lt.u32.totalorder %s273_s21, %s461_s2 }
 0x10e   :  { %p279_p9 = pnand %p277_p8, %p274_p7 }
 0x110   :  { %282 = shalt.err (!%p279_p9)
}
 0x111   :  { %147 = dma.vmem_to_hbm [thread:$0]  %s142_s16, 128, %s461_s2, [#allocation4], %s339_s0, %s339_s0, %s340_s13  }
 0x112   :  { %130 = vrot.lane.b32.xlu1 %v191_v10, %s339_s0  ;;  %122 = vrot.lane.b32.xlu0 %v191_v10, %s344_s17  ;;  %s345_s28 = smov [#allocation8]   ;;  %s346_s30 = smov [#allocation10]  }
 0x113   :  { %s153_s29 = sshll.u32 %s345_s28, 4  ;;  %s165_s5 = sshll.u32 %s346_s30, 4  ;;  %s154_s29 = int_to_ptr.vmem [resolvable:$true] %s153_s29  ;;  %s420_s5 = int_to_ptr.vmem [resolvable:$true] %s165_s5 }
 0x114   :  { %s283_s2 = scalar_lea.vmem %s154_s29, 128  ;;  %p288_p11 = scmp.lt.s32.totalorder %s154_s29, %s154_s29 }
 0x115   :  { %p284_p10 = scmp.ne.s32.totalorder %s154_s29, %s283_s2  ;;  %p289_p12 = scmp.lt.s32.totalorder %s283_s2, %s283_s2 }
 0x117   :  { %p290_p13 = por %p289_p12, %p288_p11 }
 0x119   :  { %p291_p0 = pnand %p290_p13, %p284_p10 }
 0x179   :  { %v129_v12 = vpop.permute.xlu1 %128  ;;  %v121_v13 = vpop.permute.xlu0 %120 }
 0x17a   :  { %134 = vst.msk [vmem:[#allocation10] sm:$0xf] %vm117_vm2, %v129_v12  ;;  %126 = vst.msk [vmem:[#allocation8] sm:$0xf] %vm117_vm2, %v121_v13 }
 0x184   :  { %v131_v14 = vpop.permute.xlu1 %130  ;;  %v123_v15 = vpop.permute.xlu0 %122 }
 0x185   :  { %135 = vst.msk [vmem:[#allocation10 + $0x4] sm:$0xf] %vm117_vm2, %v131_v14  ;;  %127 = vst.msk [vmem:[#allocation8 + $0x4] sm:$0xf] %vm117_vm2, %v123_v15 }
 0x186   :  { %294 = shalt.err (!%p291_p0)
}
 0x187   :  { %s295_s8 = scalar_lea.hbm %s462_s3, 128 }
 0x188   :  { %p296_p1 = scmp.ne.s32.totalorder %s462_s3, %s295_s8  ;;  %p299_p2 = scmp.lt.u32.totalorder %s295_s8, %s462_s3 }
 0x18a   :  { %p301_p3 = pnand %p299_p2, %p296_p1 }
 0x18c   :  { %304 = shalt.err (!%p301_p3)
}
 0x18d   :  { %159 = dma.vmem_to_hbm [thread:$0]  %s154_s29, 128, %s462_s3, [#allocation9], %s339_s0, %s339_s0, %s340_s13  }
 0x18e   :  { %s305_s1 = scalar_lea.vmem %s420_s5, 128  ;;  %p310_p5 = scmp.lt.s32.totalorder %s420_s5, %s420_s5 }
 0x18f   :  { %p306_p4 = scmp.ne.s32.totalorder %s420_s5, %s305_s1  ;;  %p311_p6 = scmp.lt.s32.totalorder %s305_s1, %s305_s1 }
 0x191   :  { %p312_p7 = por %p311_p6, %p310_p5 }
 0x193   :  { %p313_p8 = pnand %p312_p7, %p306_p4 }
 0x195   :  { %316 = shalt.err (!%p313_p8)
}
 0x196   :  { %s317_s18 = scalar_lea.hbm %s463_s4, 128 }
 0x197   :  { %p318_p9 = scmp.ne.s32.totalorder %s463_s4, %s317_s18  ;;  %p321_p10 = scmp.lt.u32.totalorder %s317_s18, %s463_s4 }
 0x199   :  { %p323_p11 = pnand %p321_p10, %p318_p9 }
 0x19b   :  { %326 = shalt.err (!%p323_p11)
}
 0x19c   :  { %171 = dma.vmem_to_hbm [thread:$0]  %s420_s5, 128, %s463_s4, [#allocation9], %s339_s0, %s339_s0, %s340_s13  }
 0x19d   :  { %331 = dma.done.wait [#allocation4], 128  }
 0x19e   :  { %332 = vsyncadd [#allocation4], 4294967168 }
 0x19f   :  { %333 = dma.done.wait [#allocation9], 256  }
 0x1a0   :  { %334 = vsyncadd [#allocation9], 4294967040 }
 0x1a1   :  { %181 = vsyncpa [#allocation3], 1 }
 0x1a2   :  { %182 = vsyncpa [#allocation6], 1 }
 0x1a3   :  { %183 = vsyncpa [#allocation4], 1 }
 0x1a4   :  { %184 = vsyncpa [#allocation9], 1 }

</bundles_post_ra>
